<compile_context>
chip_gen: v7x
topology: tpu7x:2x2x1
jax: 0.10.0
libtpu: 0.0.40
codegen_flags: <defaults>
</compile_context>

<pallas_src>
from functools import partial

import jax
import jax.numpy as jnp
from jax.experimental import pallas as pl
from jax.experimental.pallas import tpu as pltpu


def duel_role_kernel(x_ref, w_bert_ref, b_bert_ref, w_gate_ref, w_final_ref,
                     out_ref):
    """Fused DuelRole forward.

    x_ref      : (2*Mh, Hb)  stacked CLS rows, rows [0:Mh)=d, [Mh:2Mh)=p
                 (already in the MXU compute dtype)
    w_bert_ref : (Hb, H)     fc_bert weight (compute dtype)
    b_bert_ref : (1, H)      fc_bert bias (f32)
    w_gate_ref : (H, 2H)     [w_ddd | w_pdd] (compute dtype)
    w_final_ref: (H, O)      fc_final weight (compute dtype)
    out_ref    : (Mh, 2*O)   lanes [0:O)=d output, [O:2O)=p output (f32)
    """
    M2 = x_ref.shape[0]
    Mh = M2 // 2
    H = w_gate_ref.shape[0]
    O = w_final_ref.shape[1]

    def mxu(a, w):
        # MXU matmul, f32 accumulation; LHS cast to the weight dtype
        # (no-op for f32, bf16 on v5e/v6e/v7x bf16 path).
        return jnp.dot(a.astype(w.dtype), w, preferred_element_type=jnp.float32)

    # ---- Shared fc_bert: one MXU op for both branches ----
    h = mxu(x_ref[...], w_bert_ref[...]) + b_bert_ref[...]        # (2Mh, H) f32

    # d rows use w_ddd (left H lanes of the gate result), p rows use w_pdd
    # (right H lanes).
    row = jax.lax.broadcasted_iota(jnp.int32, (M2, H), 0)
    is_d = row < Mh

    # ---- Two gated updates, batched across branches ----
    w_gate = w_gate_ref[...]                                       # (H, 2H)
    for _ in range(2):
        g_all = mxu(h, w_gate)                                     # (2Mh, 2H)
        g = jnp.where(is_d, g_all[:, :H], g_all[:, H:])            # (2Mh, H)
        h = g * h + g                                              # f32 VPU math

    # ---- Shared fc_final + lane-dense (Mh, 2*O) store ----
    res = mxu(h, w_final_ref[...])                                 # (2Mh, O) f32
    out_ref[:, :O] = res[:Mh, :].astype(out_ref.dtype)
    out_ref[:, O:] = res[Mh:, :].astype(out_ref.dtype)


def prepare_params(params, compute_dtype=jnp.float32):
    """One-time weight packing / casting.  Call ONCE, not per forward."""
    return {
        "w_bert": jnp.asarray(params["w_bert"], compute_dtype),     # (Hb, H)
        "b_bert": jnp.asarray(params["b_bert"],
                              jnp.float32).reshape(1, -1),           # (1, H)
        "w_gate": jnp.concatenate(
            [params["w_ddd"], params["w_pdd"]],
            axis=1).astype(compute_dtype),                           # (H, 2H)
        "w_final": jnp.asarray(params["w_final"], compute_dtype),    # (H, O)
    }


@partial(jax.jit, static_argnames=("compute_dtype",))
def duel_role_forward(d_pooler_output, p_pooler_output, prepared,
                      compute_dtype=jnp.float32):
    B, _, Hb = d_pooler_output.shape
    H = prepared["w_gate"].shape[0]
    O = prepared["w_final"].shape[1]
    itemsize = jnp.dtype(compute_dtype).itemsize

    # Per-branch rows padded to the sublane multiple so all loads/stores and
    # MXU operands are unmasked.
    pad = 8 if itemsize == 4 else 16
    Mh = -(-B // pad) * pad

    # CLS slice + branch stacking + padding: cheap XLA copies over (B, Hb)
    # only (the full (B, S, Hb) tensors never reach the kernel / VMEM).
    d_cls = d_pooler_output[:, 0, :].astype(compute_dtype)
    p_cls = p_pooler_output[:, 0, :].astype(compute_dtype)
    x = jnp.concatenate(
        [jnp.pad(d_cls, ((0, Mh - B), (0, 0))),
         jnp.pad(p_cls, ((0, Mh - B), (0, 0)))], axis=0)             # (2Mh, Hb)

    # Explicit VMEM budget: inputs + output + f32 intermediates, with headroom.
    vmem_bytes = (
        2 * Mh * Hb * itemsize          # x
        + Hb * H * itemsize             # w_bert
        + 8 * H * 4                     # b_bert (sublane-padded)
        + H * 2 * H * itemsize          # w_gate
        + H * O * itemsize              # w_final
        + Mh * 2 * O * 4                # out
        + 2 * Mh * (H + 2 * H + O) * 4  # h / g_all / res intermediates
    )
    vmem_limit = min(max(2 * vmem_bytes + (4 << 20), 16 << 20), 64 << 20)

    out_packed = pl.pallas_call(
        duel_role_kernel,
        out_shape=jax.ShapeDtypeStruct((Mh, 2 * O), jnp.float32),
        in_specs=[pl.BlockSpec(memory_space=pltpu.MemorySpace.VMEM)
                  for _ in range(5)],
        out_specs=pl.BlockSpec(memory_space=pltpu.MemorySpace.VMEM),
        compiler_params=pltpu.CompilerParams(vmem_limit_bytes=vmem_limit),
    )(x, prepared["w_bert"], prepared["b_bert"], prepared["w_gate"],
      prepared["w_final"])

    # lanes [0:O)=d, [O:2O)=p  ->  (B, 2, O), no transpose needed.
    return out_packed[:B].reshape(B, 2, O)


def duel_role_reference(d_pooler_output, p_pooler_output, params):
    """Pure-JAX reference mirroring the PyTorch forward exactly."""
    wb, bb = params["w_bert"], params["b_bert"]
    wd, wp, wf = params["w_ddd"], params["w_pdd"], params["w_final"]

    d_cls = d_pooler_output[:, 0, :] @ wb + bb
    g1 = d_cls @ wd
    d_cls = g1 * d_cls + g1
    g2 = d_cls @ wd
    d_cls = g2 * d_cls + g2

    p_cls = p_pooler_output[:, 0, :] @ wb + bb
    d1 = p_cls @ wp
    p_cls = d1 * p_cls + d1
    d2 = p_cls @ wp
    p_cls = d2 * p_cls + d2

    merge = jnp.stack([d_cls, p_cls], axis=1)
    return merge @ wf


def init_params(key, bert_hidden_size, hidden, out_dim, scale=0.02):
    """Deterministic synthetic params (nn.Linear shapes, transposed to (in,out))."""
    k1, k2, k3, k4, k5 = jax.random.split(key, 5)
    w_bert_t = scale * jax.random.normal(k1, (hidden, bert_hidden_size), jnp.float32)
    b_bert = scale * jax.random.normal(k2, (hidden,), jnp.float32)
    w_ddd_t = scale * jax.random.normal(k3, (hidden, hidden), jnp.float32)
    w_pdd_t = scale * jax.random.normal(k4, (hidden, hidden), jnp.float32)
    w_final_t = scale * jax.random.normal(k5, (out_dim, hidden), jnp.float32)
    return {
        "w_bert": w_bert_t.T,     # (bert_hidden, hidden)
        "b_bert": b_bert,         # (hidden,)
        "w_ddd": w_ddd_t.T,       # (hidden, hidden)
        "w_pdd": w_pdd_t.T,       # (hidden, hidden)
        "w_final": w_final_t.T,   # (hidden, out_dim)
    }


if __name__ == "__main__":
    # Small shapes consistent with the module's forward:
    #   num_layers=2, token_dim=16, prefix_length=4  -> out_dim = 128
    #   bert_hidden_size=128, lstm_hidden_size*2     -> hidden  = 256
    B, S = 2, 8
    bert_hidden_size = 128
    hidden = 256
    num_layers, token_dim, prefix_length = 2, 16, 4
    out_dim = num_layers * token_dim * prefix_length  # 128

    key = jax.random.PRNGKey(0)
    k_params, k_d, k_p = jax.random.split(key, 3)
    params = init_params(k_params, bert_hidden_size, hidden, out_dim)

    d_pooler = jax.random.normal(k_d, (B, S, bert_hidden_size), jnp.float32)
    p_pooler = jax.random.normal(k_p, (B, S, bert_hidden_size), jnp.float32)

    ref = duel_role_reference(d_pooler, p_pooler, params)

    # f32 path (default): bit-tight vs reference.  Weights packed/cast ONCE.
    prepared_f32 = jax.tree_util.tree_map(
        jax.block_until_ready, prepare_params(params, jnp.float32))
    out = jax.block_until_ready(duel_role_forward(d_pooler, p_pooler, prepared_f32))
    assert out.shape == (B, 2, out_dim), out.shape
    assert jnp.allclose(out, ref, atol=1e-4, rtol=1e-4), "f32 mismatch vs reference"

    # bf16 MXU path (valid on v5e/v6e/v7x): f32 accumulation, loose tolerance.
    prepared_bf16 = jax.tree_util.tree_map(
        jax.block_until_ready, prepare_params(params, jnp.bfloat16))
    out_bf16 = jax.block_until_ready(
        duel_role_forward(d_pooler, p_pooler, prepared_bf16,
                          compute_dtype=jnp.bfloat16))
    assert out_bf16.shape == (B, 2, out_dim), out_bf16.shape
    assert jnp.allclose(out_bf16, ref, atol=3e-3, rtol=3e-2), "bf16 mismatch vs reference"

    print("KERNEL_OK")
</pallas_src>

<mosaic_0001>
module attributes {stable_mosaic.version = 11 : i64} {
  func.func @duel_role_kernel(%arg0: memref<16x128xf32, #tpu.memory_space<vmem>>, %arg1: memref<128x256xf32, #tpu.memory_space<vmem>>, %arg2: memref<1x256xf32, #tpu.memory_space<vmem>>, %arg3: memref<256x512xf32, #tpu.memory_space<vmem>>, %arg4: memref<256x128xf32, #tpu.memory_space<vmem>>, %arg5: memref<8x256xf32, #tpu.memory_space<vmem>>) attributes {dimension_semantics = [], scalar_prefetch = 0 : i64, scratch_operands = 0 : i64, tpu.core_type = #tpu.core_type<tc>} {
    %c0 = arith.constant 0 : index
    %c0_0 = arith.constant 0 : index
    %0 = vector.load %arg0[%c0, %c0_0] : memref<16x128xf32, #tpu.memory_space<vmem>>, vector<16x128xf32>
    %c0_1 = arith.constant 0 : index
    %c0_2 = arith.constant 0 : index
    %1 = vector.load %arg1[%c0_1, %c0_2] : memref<128x256xf32, #tpu.memory_space<vmem>>, vector<128x256xf32>
    %cst = arith.constant dense<0.000000e+00> : vector<16x256xf32>
    %2 = tpu.matmul %0, %1, %cst {dimension_numbers = #tpu.dot_dimension_numbers<[1], [0], [0], [1], [0, 0, 1, 1], [], []>} : vector<16x128xf32>, vector<128x256xf32>, vector<16x256xf32> -> vector<16x256xf32>
    %c0_3 = arith.constant 0 : index
    %c0_4 = arith.constant 0 : index
    %3 = vector.load %arg2[%c0_3, %c0_4] : memref<1x256xf32, #tpu.memory_space<vmem>>, vector<1x256xf32>
    %4 = vector.broadcast %3 : vector<1x256xf32> to vector<16x256xf32>
    %5 = arith.addf %2, %4 : vector<16x256xf32>
    %6 = tpu.iota {dimensions = array<i32: 0>} : vector<16x256xi32>
    %c8_i32 = arith.constant 8 : i32
    %7 = vector.broadcast %c8_i32 : i32 to vector<16x256xi32>
    %8 = arith.cmpi slt, %6, %7 : vector<16x256xi32>
    %c0_5 = arith.constant 0 : index
    %c0_6 = arith.constant 0 : index
    %9 = vector.load %arg3[%c0_5, %c0_6] : memref<256x512xf32, #tpu.memory_space<vmem>>, vector<256x512xf32>
    %cst_7 = arith.constant dense<0.000000e+00> : vector<16x512xf32>
    %10 = tpu.matmul %5, %9, %cst_7 {dimension_numbers = #tpu.dot_dimension_numbers<[1], [0], [0], [1], [0, 0, 1, 1], [], []>} : vector<16x256xf32>, vector<256x512xf32>, vector<16x512xf32> -> vector<16x512xf32>
    %11 = vector.extract_strided_slice %10 {offsets = [0, 0], sizes = [16, 256], strides = [1, 1]} : vector<16x512xf32> to vector<16x256xf32>
    %12 = vector.extract_strided_slice %10 {offsets = [0, 256], sizes = [16, 256], strides = [1, 1]} : vector<16x512xf32> to vector<16x256xf32>
    %13 = arith.select %8, %11, %12 : vector<16x256xi1>, vector<16x256xf32>
    %14 = arith.mulf %13, %5 : vector<16x256xf32>
    %15 = arith.addf %14, %13 : vector<16x256xf32>
    %cst_8 = arith.constant dense<0.000000e+00> : vector<16x512xf32>
    %16 = tpu.matmul %15, %9, %cst_8 {dimension_numbers = #tpu.dot_dimension_numbers<[1], [0], [0], [1], [0, 0, 1, 1], [], []>} : vector<16x256xf32>, vector<256x512xf32>, vector<16x512xf32> -> vector<16x512xf32>
    %17 = vector.extract_strided_slice %16 {offsets = [0, 0], sizes = [16, 256], strides = [1, 1]} : vector<16x512xf32> to vector<16x256xf32>
    %18 = vector.extract_strided_slice %16 {offsets = [0, 256], sizes = [16, 256], strides = [1, 1]} : vector<16x512xf32> to vector<16x256xf32>
    %19 = arith.select %8, %17, %18 : vector<16x256xi1>, vector<16x256xf32>
    %20 = arith.mulf %19, %15 : vector<16x256xf32>
    %21 = arith.addf %20, %19 : vector<16x256xf32>
    %c0_9 = arith.constant 0 : index
    %c0_10 = arith.constant 0 : index
    %22 = vector.load %arg4[%c0_9, %c0_10] : memref<256x128xf32, #tpu.memory_space<vmem>>, vector<256x128xf32>
    %cst_11 = arith.constant dense<0.000000e+00> : vector<16x128xf32>
    %23 = tpu.matmul %21, %22, %cst_11 {dimension_numbers = #tpu.dot_dimension_numbers<[1], [0], [0], [1], [0, 0, 1, 1], [], []>} : vector<16x256xf32>, vector<256x128xf32>, vector<16x128xf32> -> vector<16x128xf32>
    %24 = vector.extract_strided_slice %23 {offsets = [0, 0], sizes = [8, 128], strides = [1, 1]} : vector<16x128xf32> to vector<8x128xf32>
    %c0_12 = arith.constant 0 : index
    %c0_13 = arith.constant 0 : index
    %25 = vector.load %arg5[%c0_12, %c0_13] : memref<8x256xf32, #tpu.memory_space<vmem>>, vector<8x128xf32>
    tpu.vector_store %arg5[%c0_12, %c0_13], %24 {strides = array<i32>} : memref<8x256xf32, #tpu.memory_space<vmem>>, vector<8x128xf32>,
    %26 = vector.extract_strided_slice %23 {offsets = [8, 0], sizes = [8, 128], strides = [1, 1]} : vector<16x128xf32> to vector<8x128xf32>
    %c0_14 = arith.constant 0 : index
    %c128 = arith.constant 128 : index
    %27 = vector.load %arg5[%c0_14, %c128] : memref<8x256xf32, #tpu.memory_space<vmem>>, vector<8x128xf32>
    tpu.vector_store %arg5[%c0_14, %c128], %26 {strides = array<i32>} : memref<8x256xf32, #tpu.memory_space<vmem>>, vector<8x128xf32>,
    return
  }
}

</mosaic_0001>

<bundles_post_ra>
// kernel: duel_role_forward.1
= control target key start
LH: loop header
LB: loop body
LE: loop exit
PB: predicated region body
PF: predicated region fallthrough
CT: control target
= control target key end

     0   :  { %10 = vsyncpa [#allocation3], 0  ;;  %s1591_s0 = inlined_call_operand.vmem [shape: f32[16,128], index: 0, kind: input, shape index: {}]   ;;  %s1592_s1 = inlined_call_operand.hbm [shape: f32[128,256], index: 1, kind: input, shape index: {}]   ;;  %s1593_s2 = inlined_call_operand.vmem [shape: f32[1,256], index: 2, kind: input, shape index: {}]   ;;  %s1594_s3 = inlined_call_operand.hbm [shape: f32[256,512], index: 3, kind: input, shape index: {}]   ;;  %s1595_s4 = inlined_call_operand.hbm [shape: f32[256,128], index: 4, kind: input, shape index: {}]   ;;  %s1596_s5 = inlined_call_operand.vmem [shape: f32[8,256], index: 5, kind: output, shape index: {}]  }
   0x1   :  { %11 = vsyncpa [#allocation5], 0  ;;  %s1202_s18 = smov [#allocation4]   ;;  %s1132_s22 = scalar_lea.hbm %s1594_s3, 16384 }
   0x2   :  { %s33_s19 = sshll.u32 %s1202_s18, 4  ;;  %p1133_p0 = scmp.ne.s32.totalorder %s1594_s3, %s1132_s22  ;;  %s34_s19 = int_to_ptr.vmem [resolvable:$true] %s33_s19 }
   0x3   :  { %p1136_p1 = scmp.lt.u32.totalorder %s1132_s22, %s1594_s3 }
   0x5   :  { %p1138_p2 = pnand %p1136_p1, %p1133_p0 }
   0x7   :  { %1141 = shalt.err (!%p1138_p2)
}
   0x8   :  { %s1142_s27 = scalar_lea.vmem %s34_s19, 16384  ;;  %p1147_p4 = scmp.lt.s32.totalorder %s34_s19, %s34_s19 }
   0x9   :  { %p1143_p3 = scmp.ne.s32.totalorder %s34_s19, %s1142_s27  ;;  %p1148_p5 = scmp.lt.s32.totalorder %s1142_s27, %s1142_s27 }
   0xb   :  { %p1149_p6 = por %p1148_p5, %p1147_p4 }
   0xd   :  { %p1150_p7 = pnand %p1149_p6, %p1143_p3 }
   0xf   :  { %1153 = shalt.err (!%p1150_p7)
}
  0x10   :  { %s1203_s28 = smov 512   ;;  %s1204_s29 = smov 32  }
  0x11   :  { %39 = dma.hbm_to_vmem [thread:$0]  %s1594_s3, 16384, %s34_s19, [#allocation5], %s1203_s28, %s1203_s28, %s1204_s29  }
  0x12   :  { %s1205_s7 = smov [#allocation2]   ;;  %s1154_s11 = scalar_lea.hbm %s1592_s1, 4096 }
  0x13   :  { %s19_s8 = sshll.u32 %s1205_s7, 4  ;;  %p1155_p8 = scmp.ne.s32.totalorder %s1592_s1, %s1154_s11  ;;  %s20_s8 = int_to_ptr.vmem [resolvable:$true] %s19_s8 }
  0x14   :  { %p1158_p9 = scmp.lt.u32.totalorder %s1154_s11, %s1592_s1 }
  0x16   :  { %p1160_p10 = pnand %p1158_p9, %p1155_p8 }
  0x18   :  { %1163 = shalt.err (!%p1160_p10)
}
  0x19   :  { %s1164_s16 = scalar_lea.vmem %s20_s8, 4096  ;;  %p1169_p12 = scmp.lt.s32.totalorder %s20_s8, %s20_s8 }
  0x1a   :  { %p1165_p11 = scmp.ne.s32.totalorder %s20_s8, %s1164_s16  ;;  %p1170_p13 = scmp.lt.s32.totalorder %s1164_s16, %s1164_s16 }
  0x1c   :  { %p1171_p0 = por %p1170_p13, %p1169_p12 }
  0x1e   :  { %p1172_p1 = pnand %p1171_p0, %p1165_p11 }
  0x20   :  { %1175 = shalt.err (!%p1172_p1)
}
  0x21   :  { %s1206_s3 = smov 256   ;;  %s1207_s17 = smov 16  }
  0x22   :  { %25 = dma.hbm_to_vmem [thread:$0]  %s1592_s1, 4096, %s20_s8, [#allocation3], %s1206_s3, %s1206_s3, %s1207_s17  }
  0x23   :  { %s1208_s20 = smov [#allocation6]   ;;  %s1176_s24 = scalar_lea.hbm %s1595_s4, 4096 }
  0x24   :  { %s45_s21 = sshll.u32 %s1208_s20, 4  ;;  %p1177_p2 = scmp.ne.s32.totalorder %s1595_s4, %s1176_s24  ;;  %s46_s21 = int_to_ptr.vmem [resolvable:$true] %s45_s21 }
  0x25   :  { %p1180_p3 = scmp.lt.u32.totalorder %s1176_s24, %s1595_s4 }
  0x27   :  { %p1182_p4 = pnand %p1180_p3, %p1177_p2 }
  0x29   :  { %1185 = shalt.err (!%p1182_p4)
}
  0x2a   :  { %s1186_s29 = scalar_lea.vmem %s46_s21, 4096  ;;  %p1191_p6 = scmp.lt.s32.totalorder %s46_s21, %s46_s21 }
  0x2b   :  { %p1187_p5 = scmp.ne.s32.totalorder %s46_s21, %s1186_s29  ;;  %p1192_p7 = scmp.lt.s32.totalorder %s1186_s29, %s1186_s29 }
  0x2d   :  { %p1193_p8 = por %p1192_p7, %p1191_p6 }
  0x2f   :  { %p1194_p9 = pnand %p1193_p8, %p1187_p5 }
  0x31   :  { %1197 = shalt.err (!%p1194_p9)
}
  0x32   :  { %s1209_s1 = smov 128   ;;  %s1210_s30 = smov 8  }
  0x33   :  { %51 = dma.hbm_to_vmem [thread:$0]  %s1595_s4, 4096, %s46_s21, [#allocation5], %s1209_s1, %s1209_s1, %s1210_s30  }
  0x34   :  { %1198 = dma.done.wait [#allocation3], 4096  }
  0x35   :  { %1199 = vsyncadd [#allocation3], 4294963200 }
  0x36   :  { %1200 = dma.done.wait [#allocation5], 20480  }
  0x37   :  { %1201 = vsyncadd [#allocation5], 4294946816  ;;  %v1211_v0 = vmov 0.0   ;;  %v64_v1 = vld [vmem:[#allocation2 + $0x8] sm:$0xff]  ;;  %v66_v2 = vld [vmem:[#allocation2 + $0x18] sm:$0xff] }
  0x38   :  { %171 = vmatprep.mubr.f32.mxu0 %v1211_v0  ;;  %v63_v3 = vld [vmem:[#allocation2] sm:$0xff]  ;;  %v802_v4 = vpack.c.bf16 %v66_v2, %v64_v1  ;;  %v65_v5 = vld [vmem:[#allocation2 + $0x10] sm:$0xff]  ;;  %v68_v6 = vld [vmem:[#allocation2 + $0x28] sm:$0xff] }
  0x39   :  { %v70_v7 = vld [vmem:[#allocation2 + $0x38] sm:$0xff]  ;;  %v804_v8 = vpack.c.bf16 %v65_v5, %v63_v3  ;;  %v67_v10 = vld [vmem:[#allocation2 + $0x20] sm:$0xff]  ;;  %v69_v11 = vld [vmem:[#allocation2 + $0x30] sm:$0xff] }
  0x3a   :  { %v806_v9 = vpack.c.bf16 %v70_v7, %v68_v6  ;;  %v72_v12 = vld [vmem:[#allocation2 + $0x48] sm:$0xff]  ;;  %803 = vmatprep.subr.bf16.mxu0 %v802_v4  ;;  %v74_v13 = vld [vmem:[#allocation2 + $0x58] sm:$0xff]  ;;  %v808_v14 = vpack.c.bf16 %v69_v11, %v67_v10  ;;  %v71_v16 = vld [vmem:[#allocation2 + $0x40] sm:$0xff] }
  0x3b   :  { %805 = vmatpush1.bf16.msra.mxu0 %v804_v8  ;;  %v810_v15 = vpack.c.bf16 %v74_v13, %v72_v12  ;;  %v73_v17 = vld [vmem:[#allocation2 + $0x50] sm:$0xff]  ;;  %v76_v18 = vld [vmem:[#allocation2 + $0x68] sm:$0xff]  ;;  %v78_v19 = vld [vmem:[#allocation2 + $0x78] sm:$0xff] }
  0x3c   :  { %807 = vmatprep.subr.bf16.mxu0 %v806_v9  ;;  %v812_v20 = vpack.c.bf16 %v73_v17, %v71_v16  ;;  %v814_v21 = vpack.c.bf16 %v78_v19, %v76_v18  ;;  %v75_v22 = vld [vmem:[#allocation2 + $0x60] sm:$0xff]  ;;  %v77_v23 = vld [vmem:[#allocation2 + $0x70] sm:$0xff]  ;;  %v80_v24 = vld [vmem:[#allocation2 + $0x88] sm:$0xff] }
  0x3d   :  { %v82_v25 = vld [vmem:[#allocation2 + $0x98] sm:$0xff]  ;;  %v190_v26 = vld [vmem:[#allocation4 + $0x8] sm:$0xff]  ;;  %v816_v28 = vpack.c.bf16 %v77_v23, %v75_v22  ;;  %v79_v29 = vld [vmem:[#allocation2 + $0x80] sm:$0xff] }
  0x3e   :  { %v194_v27 = vld [vmem:[#allocation4 + $0x28] sm:$0xff]  ;;  %v189_v31 = vld [vmem:[#allocation4] sm:$0xff]  ;;  %v818_v32 = vpack.c.bf16 %v82_v25, %v80_v24  ;;  %v81_v33 = vld [vmem:[#allocation2 + $0x90] sm:$0xff] }
  0x3f   :  { %809 = vmatpush1.bf16.msra.mxu0 %v808_v14  ;;  %v1279_v30 = vpack.c.bf16 %v194_v27, %v190_v26  ;;  %v84_v34 = vld [vmem:[#allocation2 + $0xa8] sm:$0xff]  ;;  %v193_v35 = vld [vmem:[#allocation4 + $0x20] sm:$0xff]  ;;  %v86_v36 = vld [vmem:[#allocation2 + $0xb8] sm:$0xff]  ;;  %v820_v43 = vpack.c.bf16 %v81_v33, %v79_v29 }
  0x40   :  { %811 = vmatprep.subr.bf16.mxu0 %v810_v15  ;;  %v1282_v37 = vpack.c.bf16 %v193_v35, %v189_v31  ;;  %v198_v38 = vld [vmem:[#allocation4 + $0x48] sm:$0xff]  ;;  %v197_v41 = vld [vmem:[#allocation4 + $0x40] sm:$0xff]  ;;  %v822_v47 = vpack.c.bf16 %v86_v36, %v84_v34  ;;  %v85_v48 = vld [vmem:[#allocation2 + $0xb0] sm:$0xff] }
  0x41   :  { %835 = vmatprep.subr.bf16.mxu1 %v1279_v30  ;;  %v202_v39 = vld [vmem:[#allocation4 + $0x68] sm:$0xff]  ;;  %v201_v42 = vld [vmem:[#allocation4 + $0x60] sm:$0xff]  ;;  %v90_v51 = vld [vmem:[#allocation2 + $0xd8] sm:$0xff] }
  0x42   :  { %v1284_v40 = vpack.c.bf16 %v202_v39, %v198_v38  ;;  %v83_v44 = vld [vmem:[#allocation2 + $0xa0] sm:$0xff]  ;;  %837 = vmatpush1.bf16.msra.mxu1 %v1282_v37  ;;  %v1287_v45 = vpack.c.bf16 %v201_v42, %v197_v41  ;;  %v206_v46 = vld [vmem:[#allocation4 + $0x88] sm:$0xff]  ;;  %v89_v59 = vld [vmem:[#allocation2 + $0xd0] sm:$0xff] }
  0x43   :  { %813 = vmatpush1.bf16.msra.mxu0 %v812_v20  ;;  %v88_v49 = vld [vmem:[#allocation2 + $0xc8] sm:$0xff]  ;;  %v205_v53 = vld [vmem:[#allocation4 + $0x80] sm:$0xff]  ;;  %v824_v57 = vpack.c.bf16 %v85_v48, %v83_v44  ;;  %v94_v3 = vld [vmem:[#allocation2 + $0xf8] sm:$0xff] }
  0x44   :  { %815 = vmatprep.subr.bf16.mxu0 %v814_v21  ;;  %839 = vmatprep.subr.bf16.mxu1 %v1284_v40  ;;  %v210_v50 = vld [vmem:[#allocation4 + $0xa8] sm:$0xff]  ;;  %v209_v54 = vld [vmem:[#allocation4 + $0xa0] sm:$0xff]  ;;  %v826_v61 = vpack.c.bf16 %v90_v51, %v88_v49  ;;  %v93_v8 = vld [vmem:[#allocation2 + $0xf0] sm:$0xff] }
  0x45   :  { %v1290_v52 = vpack.c.bf16 %v210_v50, %v206_v46  ;;  %v214_v55 = vld [vmem:[#allocation4 + $0xc8] sm:$0xff]  ;;  %v87_v58 = vld [vmem:[#allocation2 + $0xc0] sm:$0xff]  ;;  %v1293_v60 = vpack.c.bf16 %v209_v54, %v205_v53  ;;  %v192_v11 = vld [vmem:[#allocation4 + $0x18] sm:$0xff] }
  0x46   :  { %v218_v56 = vld [vmem:[#allocation4 + $0xe8] sm:$0xff]  ;;  %841 = vmatpush1.bf16.msra.mxu1 %v1287_v45  ;;  %v213_v1 = vld [vmem:[#allocation4 + $0xc0] sm:$0xff]  ;;  %v828_v6 = vpack.c.bf16 %v89_v59, %v87_v58  ;;  %v196_v15 = vld [vmem:[#allocation4 + $0x38] sm:$0xff] }
  0x47   :  { %817 = vmatpush1.bf16.msra.mxu0 %v816_v28  ;;  %v92_v62 = vld [vmem:[#allocation2 + $0xe8] sm:$0xff]  ;;  %843 = vmatprep.subr.bf16.mxu1 %v1290_v52  ;;  %v1296_v63 = vpack.c.bf16 %v218_v56, %v214_v55  ;;  %v217_v2 = vld [vmem:[#allocation4 + $0xe0] sm:$0xff]  ;;  %v1307_v20 = vpack.c.bf16 %v196_v15, %v192_v11  ;;  %v191_v21 = vld [vmem:[#allocation4 + $0x10] sm:$0xff] }
  0x48   :  { %819 = vmatprep.subr.bf16.mxu0 %v818_v32  ;;  %v222_v4 = vld [vmem:[#allocation4 + $0x108] sm:$0xff]  ;;  %v91_v7 = vld [vmem:[#allocation2 + $0xe0] sm:$0xff]  ;;  %v1299_v9 = vpack.c.bf16 %v217_v2, %v213_v1  ;;  %v830_v10 = vpack.c.bf16 %v94_v3, %v92_v62  ;;  %v195_v22 = vld [vmem:[#allocation4 + $0x30] sm:$0xff] }
  0x49   :  { %v226_v5 = vld [vmem:[#allocation4 + $0x128] sm:$0xff]  ;;  %v221_v13 = vld [vmem:[#allocation4 + $0x100] sm:$0xff]  ;;  %v832_v18 = vpack.c.bf16 %v93_v8, %v91_v7  ;;  %v200_v23 = vld [vmem:[#allocation4 + $0x58] sm:$0xff]  ;;  %v1315_v32 = vpack.c.bf16 %v195_v22, %v191_v21 }
  0x4a   :  { %845 = vmatpush1.bf16.msra.mxu1 %v1293_v60  ;;  %v1302_v12 = vpack.c.bf16 %v226_v5, %v222_v4  ;;  %v225_v14 = vld [vmem:[#allocation4 + $0x120] sm:$0xff]  ;;  %v230_v16 = vld [vmem:[#allocation4 + $0x148] sm:$0xff]  ;;  %v204_v25 = vld [vmem:[#allocation4 + $0x78] sm:$0xff] }
  0x4b   :  { %821 = vmatpush1.bf16.msra.mxu0 %v820_v43  ;;  %847 = vmatprep.subr.bf16.mxu1 %v1296_v63  ;;  %v234_v17 = vld [vmem:[#allocation4 + $0x168] sm:$0xff]  ;;  %v1305_v19 = vpack.c.bf16 %v225_v14, %v221_v13  ;;  %v229_v26 = vld [vmem:[#allocation4 + $0x140] sm:$0xff]  ;;  %v1319_v33 = vpack.c.bf16 %v204_v25, %v200_v23  ;;  %v199_v34 = vld [vmem:[#allocation4 + $0x50] sm:$0xff] }
  0x4c   :  { %823 = vmatprep.subr.bf16.mxu0 %v822_v47  ;;  %v1310_v24 = vpack.c.bf16 %v234_v17, %v230_v16  ;;  %v233_v27 = vld [vmem:[#allocation4 + $0x160] sm:$0xff]  ;;  %v238_v28 = vld [vmem:[#allocation4 + $0x188] sm:$0xff]  ;;  %v203_v35 = vld [vmem:[#allocation4 + $0x70] sm:$0xff] }
  0x4d   :  { %v242_v29 = vld [vmem:[#allocation4 + $0x1a8] sm:$0xff]  ;;  %v61_v31 = vld [vmem:[%s1591_s0] sm:$0xff]  ;;  %v208_v36 = vld [vmem:[#allocation4 + $0x98] sm:$0xff]  ;;  %v1322_v38 = vpack.c.bf16 %v233_v27, %v229_v26  ;;  %v1331_v48 = vpack.c.bf16 %v203_v35, %v199_v34 }
  0x4e   :  { %849 = vmatpush1.bf16.msra.mxu1 %v1299_v9  ;;  %v212_v39 = vld [vmem:[#allocation4 + $0xb8] sm:$0xff]  ;;  %v1324_v41 = vpack.c.bf16 %v242_v29, %v238_v28  ;;  %v237_v42 = vld [vmem:[#allocation4 + $0x180] sm:$0xff]  ;;  %v246_v44 = vld [vmem:[#allocation4 + $0x1c8] sm:$0xff] }
  0x4f   :  { %825 = vmatpush1.bf16.msra.mxu0 %v824_v57  ;;  %851 = vmatprep.subr.bf16.mxu1 %v1302_v12  ;;  %v241_v43 = vld [vmem:[#allocation4 + $0x1a0] sm:$0xff]  ;;  %v250_v46 = vld [vmem:[#allocation4 + $0x1e8] sm:$0xff]  ;;  %v1334_v49 = vpack.c.bf16 %v212_v39, %v208_v36  ;;  %v207_v50 = vld [vmem:[#allocation4 + $0x90] sm:$0xff] }
  0x50   :  { %827 = vmatprep.subr.bf16.mxu0 %v826_v61  ;;  %v62_v47 = vld [vmem:[%s1591_s0 + $0x8] sm:$0xff]  ;;  %v211_v51 = vld [vmem:[#allocation4 + $0xb0] sm:$0xff]  ;;  %v216_v53 = vld [vmem:[#allocation4 + $0xd8] sm:$0xff]  ;;  %v1337_v54 = vpack.c.bf16 %v241_v43, %v237_v42  ;;  %v1340_v55 = vpack.c.bf16 %v250_v46, %v246_v44 }
  0x51   :  { %v245_v56 = vld [vmem:[#allocation4 + $0x1c0] sm:$0xff]  ;;  %v254_v58 = vld [vmem:[#allocation4 + $0x208] sm:$0xff]  ;;  %v1343_v61 = vpack.c.bf16 %v211_v51, %v207_v50  ;;  %v215_v1 = vld [vmem:[#allocation4 + $0xd0] sm:$0xff] }
  0x52   :  { %853 = vmatpush1.bf16.msra.mxu1 %v1305_v19  ;;  %v249_v57 = vld [vmem:[#allocation4 + $0x1e0] sm:$0xff]  ;;  %v258_v59 = vld [vmem:[#allocation4 + $0x228] sm:$0xff]  ;;  %v219_v2 = vld [vmem:[#allocation4 + $0xf0] sm:$0xff] }
  0x53   :  { %829 = vmatpush1.bf16.msra.mxu0 %v828_v6  ;;  %855 = vmatprep.subr.bf16.mxu1 %v1310_v24  ;;  %v224_v3 = vld [vmem:[#allocation4 + $0x118] sm:$0xff]  ;;  %v1349_v4 = vpack.c.bf16 %v249_v57, %v245_v56  ;;  %v1352_v6 = vpack.c.bf16 %v258_v59, %v254_v58  ;;  %v253_v7 = vld [vmem:[#allocation4 + $0x200] sm:$0xff]  ;;  %v266_v11 = vld [vmem:[#allocation4 + $0x268] sm:$0xff]  ;;  %v1355_v13 = vpack.c.bf16 %v219_v2, %v215_v1 }
  0x54   :  { %831 = vmatprep.subr.bf16.mxu0 %v830_v10  ;;  %v228_v5 = vld [vmem:[#allocation4 + $0x138] sm:$0xff]  ;;  %v257_v8 = vld [vmem:[#allocation4 + $0x220] sm:$0xff]  ;;  %v262_v10 = vld [vmem:[#allocation4 + $0x248] sm:$0xff] }
  0x55   :  { %v1358_v14 = vpack.c.bf16 %v228_v5, %v224_v3  ;;  %v223_v15 = vld [vmem:[#allocation4 + $0x110] sm:$0xff]  ;;  %v232_v17 = vld [vmem:[#allocation4 + $0x158] sm:$0xff]  ;;  %v1364_v22 = vpack.c.bf16 %v266_v11, %v262_v10  ;;  %v261_v23 = vld [vmem:[#allocation4 + $0x240] sm:$0xff] }
  0x56   :  { %857 = vmatpush1.bf16.msra.mxu1 %v1322_v38  ;;  %v227_v16 = vld [vmem:[#allocation4 + $0x130] sm:$0xff]  ;;  %v236_v21 = vld [vmem:[#allocation4 + $0x178] sm:$0xff]  ;;  %v265_v25 = vld [vmem:[#allocation4 + $0x260] sm:$0xff] }
  0x57   :  { %833 = vmatpush1.bf16.msra.mxu0 %v832_v18  ;;  %859 = vmatprep.subr.bf16.mxu1 %v1324_v41  ;;  %v1361_v18 = vpack.c.bf16 %v257_v8, %v253_v7  ;;  %v270_v26 = vld [vmem:[#allocation4 + $0x288] sm:$0xff]  ;;  %v1367_v28 = vpack.c.bf16 %v227_v16, %v223_v15  ;;  %v1370_v29 = vpack.c.bf16 %v236_v21, %v232_v17  ;;  %v235_v34 = vld [vmem:[#allocation4 + $0x170] sm:$0xff]  ;;  %v240_v35 = vld [vmem:[#allocation4 + $0x198] sm:$0xff] }
  0x58   :  { %899 = vmatprep.subr.bf16.mxu0 %v1307_v20  ;;  %v274_v27 = vld [vmem:[#allocation4 + $0x2a8] sm:$0xff]  ;;  %v1373_v36 = vpack.c.bf16 %v265_v25, %v261_v23  ;;  %v244_v39 = vld [vmem:[#allocation4 + $0x1b8] sm:$0xff]  ;;  %v269_v43 = vld [vmem:[#allocation4 + $0x280] sm:$0xff] }
  0x59   :  { %v1376_v42 = vpack.c.bf16 %v274_v27, %v270_v26  ;;  %v273_v44 = vld [vmem:[#allocation4 + $0x2a0] sm:$0xff]  ;;  %v278_v46 = vld [vmem:[#allocation4 + $0x2c8] sm:$0xff]  ;;  %v1382_v51 = vpack.c.bf16 %v244_v39, %v240_v35  ;;  %v248_v56 = vld [vmem:[#allocation4 + $0x1d8] sm:$0xff] }
  0x5a   :  { %172 = vmatmul.mubr.f32.vlgmr.msra.gmra.mrb[0].mxu0 %v61_v31  ;;  %861 = vmatpush1.bf16.msra.mxu1 %v1337_v54  ;;  %v231_v31 = vld [vmem:[#allocation4 + $0x150] sm:$0xff]  ;;  %v1385_v57 = vpack.c.bf16 %v273_v44, %v269_v43  ;;  %v252_v58 = vld [vmem:[#allocation4 + $0x1f8] sm:$0xff]  ;;  %v277_v1 = vld [vmem:[#allocation4 + $0x2c0] sm:$0xff] }
  0x5b   :  { %177 = vmatprep.mubr.f32.mxu0 %v1211_v0  ;;  %901 = vmatpush1.bf16.msra.mxu0 %v1315_v32  ;;  %v220_v0 = vld [vmem:[#allocation4 + $0xf8] sm:$0xff]  ;;  %v1379_v50 = vpack.c.bf16 %v235_v34, %v231_v31  ;;  %v281_v2 = vld [vmem:[#allocation4 + $0x2e0] sm:$0xff]  ;;  %v286_v3 = vld [vmem:[#allocation4 + $0x308] sm:$0xff]  ;;  %v1394_v8 = vpack.c.bf16 %v252_v58, %v248_v56 }
  0x5c   :  { %903 = vmatprep.subr.bf16.mxu0 %v1319_v33  ;;  %v1346_v62 = vpack.c.bf16 %v220_v0, %v216_v53  ;;  %863 = vmatprep.subr.bf16.mxu1 %v1340_v55  ;;  %v239_v53 = vld [vmem:[#allocation4 + $0x190] sm:$0xff]  ;;  %v290_v5 = vld [vmem:[#allocation4 + $0x328] sm:$0xff]  ;;  %v256_v15 = vld [vmem:[#allocation4 + $0x218] sm:$0xff]  ;;  %v1397_v16 = vpack.c.bf16 %v281_v2, %v277_v1 }
  0x5d   :  { %v243_v0 = vld [vmem:[#allocation4 + $0x1b0] sm:$0xff]  ;;  %v260_v17 = vld [vmem:[#allocation4 + $0x238] sm:$0xff]  ;;  %v1400_v21 = vpack.c.bf16 %v290_v5, %v286_v3  ;;  %v285_v23 = vld [vmem:[#allocation4 + $0x300] sm:$0xff] }
  0x5e   :  { %178 = vmatmul.mubr.f32.gmra.mrb[2].mxu0 %v62_v47  ;;  %865 = vmatpush1.bf16.msra.mxu1 %v1349_v4  ;;  %v282_v47 = vld [vmem:[#allocation4 + $0x2e8] sm:$0xff]  ;;  %v1391_v7 = vpack.c.bf16 %v243_v0, %v239_v53  ;;  %v247_v10 = vld [vmem:[#allocation4 + $0x1d0] sm:$0xff]  ;;  %v289_v25 = vld [vmem:[#allocation4 + $0x320] sm:$0xff]  ;;  %v1406_v34 = vpack.c.bf16 %v260_v17, %v256_v15 }
  0x5f   :  { %905 = vmatpush1.bf16.msra.mxu0 %v1331_v48  ;;  %867 = vmatprep.subr.bf16.mxu1 %v1352_v6  ;;  %v1388_v59 = vpack.c.bf16 %v282_v47, %v278_v46  ;;  %v251_v11 = vld [vmem:[#allocation4 + $0x1f0] sm:$0xff]  ;;  %v294_v26 = vld [vmem:[#allocation4 + $0x348] sm:$0xff]  ;;  %v264_v43 = vld [vmem:[#allocation4 + $0x258] sm:$0xff]  ;;  %v1409_v44 = vpack.c.bf16 %v289_v25, %v285_v23 }
  0x60   :  { %907 = vmatprep.subr.bf16.mxu0 %v1334_v49  ;;  %v298_v27 = vld [vmem:[#allocation4 + $0x368] sm:$0xff]  ;;  %v1403_v31 = vpack.c.bf16 %v251_v11, %v247_v10  ;;  %v255_v35 = vld [vmem:[#allocation4 + $0x210] sm:$0xff]  ;;  %v268_v46 = vld [vmem:[#allocation4 + $0x278] sm:$0xff] }
  0x61   :  { %v259_v39 = vld [vmem:[#allocation4 + $0x230] sm:$0xff]  ;;  %1609 = vst [vmem:[#allocation9_spill] sm:$0xff] %v1409_v44  ;;  %v1412_v47 = vpack.c.bf16 %v298_v27, %v294_v26  ;;  %v293_v53 = vld [vmem:[#allocation4 + $0x340] sm:$0xff]  ;;  %v302_v56 = vld [vmem:[#allocation4 + $0x388] sm:$0xff]  ;;  %v1418_v2 = vpack.c.bf16 %v268_v46, %v264_v43 }
  0x62   :  { %869 = vmatpush1.bf16.msra.mxu1 %v1361_v18  ;;  %v297_v0 = vld [vmem:[#allocation4 + $0x360] sm:$0xff]  ;;  %v306_v58 = vld [vmem:[#allocation4 + $0x3a8] sm:$0xff]  ;;  %v1415_v1 = vpack.c.bf16 %v259_v39, %v255_v35  ;;  %v263_v3 = vld [vmem:[#allocation4 + $0x250] sm:$0xff] }
  0x63   :  { %909 = vmatpush1.bf16.msra.mxu0 %v1343_v61  ;;  %871 = vmatprep.subr.bf16.mxu1 %v1364_v22  ;;  %1610 = vst [vmem:[#allocation10_spill] sm:$0xff] %v1412_v47  ;;  %v267_v5 = vld [vmem:[#allocation4 + $0x270] sm:$0xff]  ;;  %v272_v10 = vld [vmem:[#allocation4 + $0x298] sm:$0xff]  ;;  %v1421_v11 = vpack.c.bf16 %v297_v0, %v293_v53  ;;  %v1424_v17 = vpack.c.bf16 %v306_v58, %v302_v56  ;;  %v301_v23 = vld [vmem:[#allocation4 + $0x380] sm:$0xff] }
  0x64   :  { %911 = vmatprep.subr.bf16.mxu0 %v1346_v62  ;;  %v276_v15 = vld [vmem:[#allocation4 + $0x2b8] sm:$0xff]  ;;  %v305_v25 = vld [vmem:[#allocation4 + $0x3a0] sm:$0xff]  ;;  %v1427_v26 = vpack.c.bf16 %v267_v5, %v263_v3  ;;  %v271_v35 = vld [vmem:[#allocation4 + $0x290] sm:$0xff] }
  0x65   :  { %1611 = vst [vmem:[#allocation11_spill] sm:$0xff] %v1421_v11  ;;  %1612 = vst [vmem:[#allocation12_spill] sm:$0xff] %v1424_v17  ;;  %v1430_v27 = vpack.c.bf16 %v276_v15, %v272_v10  ;;  %v275_v39 = vld [vmem:[#allocation4 + $0x2b0] sm:$0xff]  ;;  %v1433_v43 = vpack.c.bf16 %v305_v25, %v301_v23  ;;  %v280_v46 = vld [vmem:[#allocation4 + $0x2d8] sm:$0xff] }
  0x66   :  { %873 = vmatpush1.bf16.msra.mxu1 %v1373_v36  ;;  %v284_v53 = vld [vmem:[#allocation4 + $0x2f8] sm:$0xff]  ;;  %v1437_v0 = vpack.c.bf16 %v275_v39, %v271_v35  ;;  %v279_v58 = vld [vmem:[#allocation4 + $0x2d0] sm:$0xff] }
  0x67   :  { %913 = vmatpush1.bf16.msra.mxu0 %v1355_v13  ;;  %875 = vmatprep.subr.bf16.mxu1 %v1376_v42  ;;  %1613 = vst [vmem:[#allocation13_spill] sm:$0xff] %v1433_v43  ;;  %v1440_v56 = vpack.c.bf16 %v284_v53, %v280_v46  ;;  %v283_v3 = vld [vmem:[#allocation4 + $0x2f0] sm:$0xff]  ;;  %v288_v5 = vld [vmem:[#allocation4 + $0x318] sm:$0xff] }
  0x68   :  { %915 = vmatprep.subr.bf16.mxu0 %v1358_v14  ;;  %v292_v10 = vld [vmem:[#allocation4 + $0x338] sm:$0xff]  ;;  %v1444_v15 = vpack.c.bf16 %v283_v3, %v279_v58  ;;  %v287_v25 = vld [vmem:[#allocation4 + $0x310] sm:$0xff] }
  0x69   :  { %v1447_v23 = vpack.c.bf16 %v292_v10, %v288_v5  ;;  %v291_v35 = vld [vmem:[#allocation4 + $0x330] sm:$0xff]  ;;  %v296_v39 = vld [vmem:[#allocation4 + $0x358] sm:$0xff] }
  0x6a   :  { %877 = vmatpush1.bf16.msra.mxu1 %v1385_v57  ;;  %v1450_v46 = vpack.c.bf16 %v291_v35, %v287_v25  ;;  %v304_v58 = vld [vmem:[#allocation4 + $0x398] sm:$0xff]  ;;  %v314_v35 = vld [vmem:[#allocation4 + $0x3e8] sm:$0xff] }
  0x6b   :  { %917 = vmatpush1.bf16.msra.mxu0 %v1367_v28  ;;  %879 = vmatprep.subr.bf16.mxu1 %v1388_v59  ;;  %1614 = vst [vmem:[#allocation14_spill] sm:$0xff] %v1447_v23  ;;  %v308_v3 = vld [vmem:[#allocation4 + $0x3b8] sm:$0xff] }
  0x6c   :  { %919 = vmatprep.subr.bf16.mxu0 %v1370_v29  ;;  %1615 = vst [vmem:[#allocation15_spill] sm:$0xff] %v1450_v46  ;;  %v1459_v10 = vpack.c.bf16 %v308_v3, %v304_v58 }
  0x6e   :  { %881 = vmatpush1.bf16.msra.mxu1 %v1397_v16 }
  0x6f   :  { %921 = vmatpush1.bf16.msra.mxu0 %v1379_v50  ;;  %883 = vmatprep.subr.bf16.mxu1 %v1400_v21 }
  0x70   :  { %923 = vmatprep.subr.bf16.mxu0 %v1382_v51 }
  0x72   :  { %885 = vmatpush1.bf16.msra.mxu1 %v1409_v44  ;;  %v307_v44 = vld [vmem:[#allocation4 + $0x3b0] sm:$0xff] }
  0x73   :  { %925 = vmatpush1.bf16.msra.mxu0 %v1391_v7  ;;  %887 = vmatprep.subr.bf16.mxu1 %v1412_v47  ;;  %v303_v47 = vld [vmem:[#allocation4 + $0x390] sm:$0xff] }
  0x74   :  { %927 = vmatprep.subr.bf16.mxu0 %v1394_v8  ;;  %v1462_v25 = vpack.c.bf16 %v307_v44, %v303_v47  ;;  %v97_v47 = vlaneseq }
  0x76   :  { %889 = vmatpush1.bf16.msra.mxu1 %v1421_v11  ;;  %v299_v11 = vld [vmem:[#allocation4 + $0x370] sm:$0xff] }
  0x77   :  { %929 = vmatpush1.bf16.msra.mxu0 %v1403_v31  ;;  %891 = vmatprep.subr.bf16.mxu1 %v1424_v17  ;;  %v300_v17 = vld [vmem:[#allocation4 + $0x378] sm:$0xff] }
  0x78   :  { %931 = vmatprep.subr.bf16.mxu0 %v1406_v34  ;;  %v1453_v53 = vpack.c.bf16 %v300_v17, %v296_v39  ;;  %v310_v17 = vld [vmem:[#allocation4 + $0x3c8] sm:$0xff]  ;;  %v312_v39 = vld [vmem:[#allocation4 + $0x3d8] sm:$0xff] }
  0x7a   :  { %893 = vmatpush1.bf16.msra.mxu1 %v1433_v43  ;;  %1616 = vst [vmem:[#allocation16_spill] sm:$0xff] %v1453_v53  ;;  %v295_v43 = vld [vmem:[#allocation4 + $0x350] sm:$0xff] }
  0x7b   :  { %933 = vmatpush1.bf16.msra.mxu0 %v1415_v1  ;;  %v1456_v5 = vpack.c.bf16 %v299_v11, %v295_v43  ;;  %v316_v11 = vld [vmem:[#allocation4 + $0x3f8] sm:$0xff]  ;;  %v309_v43 = vld [vmem:[#allocation4 + $0x3c0] sm:$0xff] }
  0x7c   :  { %935 = vmatprep.subr.bf16.mxu0 %v1418_v2  ;;  %v1468_v58 = vpack.c.bf16 %v316_v11, %v312_v39 }
  0x7d   :  { %1617 = vst [vmem:[#allocation17_spill] sm:$0xff] %v1456_v5 }
  0x7e   :  { %1618 = vst [vmem:[#allocation18_spill] sm:$0xff] %v1468_v58 }
  0x7f   :  { %937 = vmatpush1.bf16.msra.mxu0 %v1427_v26 }
  0x80   :  { %939 = vmatprep.subr.bf16.mxu0 %v1430_v27 }
  0x83   :  { %941 = vmatpush1.bf16.msra.mxu0 %v1437_v0 }
  0x84   :  { %943 = vmatprep.subr.bf16.mxu0 %v1440_v56 }
  0x87   :  { %945 = vmatpush1.bf16.msra.mxu0 %v1444_v15 }
  0x88   :  { %947 = vmatprep.subr.bf16.mxu0 %v1447_v23  ;;  %v311_v23 = vld [vmem:[#allocation4 + $0x3d0] sm:$0xff] }
  0x8b   :  { %949 = vmatpush1.bf16.msra.mxu0 %v1450_v46  ;;  %v1466_v46 = vpack.c.bf16 %v314_v35, %v310_v17  ;;  %v98_v17 = vshrl.u32 %v97_v47, 7  ;;  %v95_v35 = vld [vmem:[%s1593_s2] sm:$0x3] }
  0x8c   :  { %951 = vmatprep.subr.bf16.mxu0 %v1453_v53  ;;  %v313_v53 = vld [vmem:[#allocation4 + $0x3e0] sm:$0xff] }
  0x8d   :  { %v1470_v3 = vpack.c.bf16 %v313_v53, %v309_v43  ;;  %895 = vmatprep.subr.bf16.mxu1 %v1466_v46  ;;  %v103_v53 = vsub.s32 1, %v98_v17  ;;  %v99_v39 = vsub.s32 0, %v98_v17 }
  0x8f   :  { %953 = vmatpush1.bf16.msra.mxu0 %v1456_v5  ;;  %1619 = vst [vmem:[#allocation19_spill] sm:$0xff] %v1470_v3  ;;  %v315_v5 = vld [vmem:[#allocation4 + $0x3f0] sm:$0xff]  ;;  %897 = vmatpush1.bf16.msra.mxu1 %v1470_v3 }
  0x90   :  { %955 = vmatprep.subr.bf16.mxu0 %v1459_v10  ;;  %v1473_v44 = vpack.c.bf16 %v315_v5, %v311_v23  ;;  %963 = vmatprep.subr.bf16.mxu1 %v1279_v30  ;;  %v104_v23 = vrot.slane %v95_v35, %v103_v53  ;;  %v100_v5 = vrot.slane %v95_v35, %v99_v39  ;;  %v657_v35 = vld [vmem:[#allocation6 + $0x40] sm:$0xff]  ;;  %v658_v39 = vld [vmem:[#allocation6 + $0x48] sm:$0xff] }
  0x92   :  { %1620 = vst [vmem:[#allocation20_spill] sm:$0xff] %v1473_v44 }
  0x93   :  { %957 = vmatpush1.bf16.msra.mxu0 %v1462_v25 }
  0x94   :  { %959 = vmatprep.subr.bf16.mxu0 %v1468_v58 }
  0x97   :  { %961 = vmatpush1.bf16.msra.mxu0 %v1473_v44 }
  0x98   :  { %1027 = vmatprep.subr.bf16.mxu0 %v1307_v20 }
 0x12d   :  { %v173_v11 = vpop.f32.mrb[0].mxu0 }
 0x12e   :  { %v175_v43 = vpop.f32.mrb[1].mxu0  ;;  %v1485_v3 = vadd.f32 %v173_v11, %v100_v5  ;;  %v1108_v11 = vpack.c.bf16 %v658_v39, %v657_v35 }
 0x12f   :  { %v1483_v58 = vadd.f32 %v175_v43, %v104_v23 }
 0x131   :  { %v179_v44 = vpop.f32.mrb[2].mxu0  ;;  %381 = vmatprep.mubr.f32.mxu1 %v1483_v58  ;;  %458 = vmatprep.mubr.f32.mxu0 %v1483_v58 }
 0x132   :  { %v181_v30 = vpop.f32.mrb[3].mxu0  ;;  %382 = vmatmul.mubr.f32.vlgmr.msra.gmra.mrb[0].mxu1 %v1485_v3  ;;  %459 = vmatmul.mubr.f32.vlgmr.msra.gmra.mrb[4].mxu0 %v1485_v3  ;;  %v1495_v47 = vadd.f32 %v179_v44, %v100_v5  ;;  %v674_v44 = vld [vmem:[#allocation6 + $0xc8] sm:$0xff]  ;;  %v676_v5 = vld [vmem:[#allocation6 + $0xd8] sm:$0xff] }
 0x133   :  { %v1491_v20 = vadd.f32 %v181_v30, %v104_v23  ;;  %965 = vmatpush1.bf16.msra.mxu1 %v1282_v37  ;;  %1029 = vmatpush1.bf16.msra.mxu0 %v1315_v32  ;;  %v1621_v37 = vld [vmem:[#allocation14_spill] sm:$0xff]  ;;  %v1631_v32 = vld [vmem:[#allocation19_spill] sm:$0xff] }
 0x134   :  { %967 = vmatprep.subr.bf16.mxu1 %v1284_v40  ;;  %1031 = vmatprep.subr.bf16.mxu0 %v1319_v33  ;;  %v1622_v40 = vld [vmem:[#allocation9_spill] sm:$0xff]  ;;  %v1632_v33 = vld [vmem:[#allocation20_spill] sm:$0xff]  ;;  %v675_v23 = vld [vmem:[#allocation6 + $0xd0] sm:$0xff] }
 0x135   :  { %387 = vmatprep.mubr.f32.mxu1 %v1491_v20  ;;  %464 = vmatprep.mubr.f32.mxu0 %v1491_v20  ;;  %v1110_v43 = vpack.c.bf16 %v676_v5, %v675_v23  ;;  %v659_v30 = vld [vmem:[#allocation6 + $0x50] sm:$0xff] }
 0x136   :  { %388 = vmatmul.mubr.f32.gmra.mrb[2].mxu1 %v1495_v47  ;;  %465 = vmatmul.mubr.f32.gmra.mrb[6].mxu0 %v1495_v47 }
 0x137   :  { %969 = vmatpush1.bf16.msra.mxu1 %v1287_v45  ;;  %1033 = vmatpush1.bf16.msra.mxu0 %v1331_v48  ;;  %v1623_v45 = vld [vmem:[#allocation15_spill] sm:$0xff] }
 0x138   :  { %971 = vmatprep.subr.bf16.mxu1 %v1290_v52  ;;  %1035 = vmatprep.subr.bf16.mxu0 %v1334_v49  ;;  %v1624_v52 = vld [vmem:[#allocation10_spill] sm:$0xff] }
 0x13b   :  { %973 = vmatpush1.bf16.msra.mxu1 %v1293_v60  ;;  %1037 = vmatpush1.bf16.msra.mxu0 %v1343_v61  ;;  %v1625_v60 = vld [vmem:[#allocation16_spill] sm:$0xff] }
 0x13c   :  { %975 = vmatprep.subr.bf16.mxu1 %v1296_v63  ;;  %1039 = vmatprep.subr.bf16.mxu0 %v1346_v62  ;;  %v1626_v63 = vld [vmem:[#allocation11_spill] sm:$0xff] }
 0x13f   :  { %977 = vmatpush1.bf16.msra.mxu1 %v1299_v9  ;;  %1041 = vmatpush1.bf16.msra.mxu0 %v1355_v13  ;;  %v1627_v9 = vld [vmem:[#allocation17_spill] sm:$0xff] }
 0x140   :  { %979 = vmatprep.subr.bf16.mxu1 %v1302_v12  ;;  %1043 = vmatprep.subr.bf16.mxu0 %v1358_v14  ;;  %v1628_v12 = vld [vmem:[#allocation12_spill] sm:$0xff]  ;;  %v667_v14 = vld [vmem:[#allocation6 + $0x90] sm:$0xff] }
 0x143   :  { %981 = vmatpush1.bf16.msra.mxu1 %v1305_v19  ;;  %1045 = vmatpush1.bf16.msra.mxu0 %v1367_v28  ;;  %v1629_v19 = vld [vmem:[#allocation13_spill] sm:$0xff] }
 0x144   :  { %983 = vmatprep.subr.bf16.mxu1 %v1310_v24  ;;  %1047 = vmatprep.subr.bf16.mxu0 %v1370_v29  ;;  %v1630_v24 = vld [vmem:[#allocation18_spill] sm:$0xff] }
 0x147   :  { %985 = vmatpush1.bf16.msra.mxu1 %v1322_v38  ;;  %1049 = vmatpush1.bf16.msra.mxu0 %v1379_v50  ;;  %v665_v38 = vld [vmem:[#allocation6 + $0x80] sm:$0xff] }
 0x148   :  { %987 = vmatprep.subr.bf16.mxu1 %v1324_v41  ;;  %1051 = vmatprep.subr.bf16.mxu0 %v1382_v51  ;;  %v666_v41 = vld [vmem:[#allocation6 + $0x88] sm:$0xff] }
 0x149   :  { %v1090_v48 = vpack.c.bf16 %v666_v41, %v665_v38 }
 0x14b   :  { %989 = vmatpush1.bf16.msra.mxu1 %v1337_v54  ;;  %1053 = vmatpush1.bf16.msra.mxu0 %v1391_v7  ;;  %v651_v7 = vld [vmem:[#allocation6 + $0x10] sm:$0xff] }
 0x14c   :  { %991 = vmatprep.subr.bf16.mxu1 %v1340_v55  ;;  %1055 = vmatprep.subr.bf16.mxu0 %v1394_v8  ;;  %v652_v8 = vld [vmem:[#allocation6 + $0x18] sm:$0xff] }
 0x14f   :  { %993 = vmatpush1.bf16.msra.mxu1 %v1349_v4  ;;  %1057 = vmatpush1.bf16.msra.mxu0 %v1403_v31  ;;  %v649_v4 = vld [vmem:[#allocation6] sm:$0xff]  ;;  %v670_v31 = vld [vmem:[#allocation6 + $0xa8] sm:$0xff] }
 0x150   :  { %995 = vmatprep.subr.bf16.mxu1 %v1352_v6  ;;  %1059 = vmatprep.subr.bf16.mxu0 %v1406_v34  ;;  %v650_v6 = vld [vmem:[#allocation6 + $0x8] sm:$0xff] }
 0x153   :  { %997 = vmatpush1.bf16.msra.mxu1 %v1361_v18  ;;  %1061 = vmatpush1.bf16.msra.mxu0 %v1415_v1  ;;  %v668_v18 = vld [vmem:[#allocation6 + $0x98] sm:$0xff]  ;;  %v1096_v1 = vpack.c.bf16 %v652_v8, %v651_v7 }
 0x154   :  { %999 = vmatprep.subr.bf16.mxu1 %v1364_v22  ;;  %1063 = vmatprep.subr.bf16.mxu0 %v1418_v2 }
 0x157   :  { %1001 = vmatpush1.bf16.msra.mxu1 %v1373_v36  ;;  %1065 = vmatpush1.bf16.msra.mxu0 %v1427_v26  ;;  %v1092_v36 = vpack.c.bf16 %v650_v6, %v649_v4 }
 0x158   :  { %1003 = vmatprep.subr.bf16.mxu1 %v1376_v42  ;;  %1067 = vmatprep.subr.bf16.mxu0 %v1430_v27  ;;  %v653_v27 = vld [vmem:[#allocation6 + $0x20] sm:$0xff] }
 0x15b   :  { %1005 = vmatpush1.bf16.msra.mxu1 %v1385_v57  ;;  %1069 = vmatpush1.bf16.msra.mxu0 %v1437_v0  ;;  %v654_v0 = vld [vmem:[#allocation6 + $0x28] sm:$0xff] }
 0x15c   :  { %1007 = vmatprep.subr.bf16.mxu1 %v1388_v59  ;;  %1071 = vmatprep.subr.bf16.mxu0 %v1440_v56  ;;  %v1094_v59 = vpack.c.bf16 %v668_v18, %v667_v14  ;;  %v671_v56 = vld [vmem:[#allocation6 + $0xb0] sm:$0xff] }
 0x15f   :  { %1009 = vmatpush1.bf16.msra.mxu1 %v1397_v16  ;;  %1073 = vmatpush1.bf16.msra.mxu0 %v1444_v15  ;;  %v672_v15 = vld [vmem:[#allocation6 + $0xb8] sm:$0xff] }
 0x160   :  { %1011 = vmatprep.subr.bf16.mxu1 %v1400_v21  ;;  %1075 = vmatprep.subr.bf16.mxu0 %v1621_v37  ;;  %v669_v21 = vld [vmem:[#allocation6 + $0xa0] sm:$0xff]  ;;  %v678_v37 = vld [vmem:[#allocation6 + $0xe8] sm:$0xff] }
 0x161   :  { %v1098_v26 = vpack.c.bf16 %v670_v31, %v669_v21 }
 0x163   :  { %1013 = vmatpush1.bf16.msra.mxu1 %v1622_v40  ;;  %1077 = vmatpush1.bf16.msra.mxu0 %v1623_v45 }
 0x164   :  { %1015 = vmatprep.subr.bf16.mxu1 %v1624_v52  ;;  %1079 = vmatprep.subr.bf16.mxu0 %v1625_v60  ;;  %v661_v52 = vld [vmem:[#allocation6 + $0x60] sm:$0xff]  ;;  %v662_v60 = vld [vmem:[#allocation6 + $0x68] sm:$0xff] }
 0x167   :  { %1017 = vmatpush1.bf16.msra.mxu1 %v1626_v63  ;;  %1081 = vmatpush1.bf16.msra.mxu0 %v1627_v9  ;;  %v1116_v63 = vpack.c.bf16 %v662_v60, %v661_v52  ;;  %v679_v9 = vld [vmem:[#allocation6 + $0xf0] sm:$0xff] }
 0x168   :  { %1019 = vmatprep.subr.bf16.mxu1 %v1628_v12  ;;  %1083 = vmatprep.subr.bf16.mxu0 %v1459_v10  ;;  %v1102_v10 = vpack.c.bf16 %v672_v15, %v671_v56  ;;  %v680_v12 = vld [vmem:[#allocation6 + $0xf8] sm:$0xff] }
 0x16b   :  { %1021 = vmatpush1.bf16.msra.mxu1 %v1629_v19  ;;  %1085 = vmatpush1.bf16.msra.mxu0 %v1462_v25  ;;  %v655_v25 = vld [vmem:[#allocation6 + $0x30] sm:$0xff]  ;;  %v1118_v19 = vpack.c.bf16 %v680_v12, %v679_v9 }
 0x16c   :  { %1023 = vmatprep.subr.bf16.mxu1 %v1466_v46  ;;  %1087 = vmatprep.subr.bf16.mxu0 %v1630_v24  ;;  %v1100_v46 = vpack.c.bf16 %v654_v0, %v653_v27  ;;  %v663_v24 = vld [vmem:[#allocation6 + $0x70] sm:$0xff] }
 0x16f   :  { %1025 = vmatpush1.bf16.msra.mxu1 %v1631_v32  ;;  %1089 = vmatpush1.bf16.msra.mxu0 %v1632_v33  ;;  %v664_v32 = vld [vmem:[#allocation6 + $0x78] sm:$0xff] }
 0x170   :  { %1091 = vmatprep.subr.bf16.mxu1 %v1090_v48  ;;  %v1120_v33 = vpack.c.bf16 %v664_v32, %v663_v24 }
 0x205   :  { %v383_v49 = vpop.f32.mrb[0].mxu1  ;;  %v460_v54 = vpop.f32.mrb[4].mxu0 }
 0x206   :  { %v475_v55 = vmul.f32 %v383_v49, %v1485_v3  ;;  %v385_v61 = vpop.f32.mrb[1].mxu1  ;;  %v462_v62 = vpop.f32.mrb[5].mxu0  ;;  %v673_v3 = vld [vmem:[#allocation6 + $0xc0] sm:$0xff] }
 0x207   :  { %v476_v13 = vmul.f32 %v385_v61, %v1483_v58  ;;  %v656_v58 = vld [vmem:[#allocation6 + $0x38] sm:$0xff]  ;;  %v1106_v53 = vpack.c.bf16 %v674_v44, %v673_v3 }
 0x208   :  { %v1565_v42 = vadd.f32 %v475_v55, %v383_v49  ;;  %v1104_v17 = vpack.c.bf16 %v656_v58, %v655_v25 }
 0x209   :  { %v1563_v22 = vadd.f32 %v476_v13, %v385_v61  ;;  %v389_v28 = vpop.f32.mrb[2].mxu1  ;;  %v466_v29 = vpop.f32.mrb[6].mxu0 }
 0x20a   :  { %v477_v50 = vmul.f32 %v466_v29, %v1495_v47  ;;  %v391_v51 = vpop.f32.mrb[3].mxu1  ;;  %v468_v57 = vpop.f32.mrb[7].mxu0  ;;  %v677_v47 = vld [vmem:[#allocation6 + $0xe0] sm:$0xff] }
 0x20b   :  { %v478_v16 = vmul.f32 %v468_v57, %v1491_v20  ;;  %547 = vmatprep.mubr.f32.mxu1 %v1563_v22  ;;  %624 = vmatprep.mubr.f32.mxu0 %v1563_v22  ;;  %v660_v20 = vld [vmem:[#allocation6 + $0x58] sm:$0xff]  ;;  %v1114_v45 = vpack.c.bf16 %v678_v37, %v677_v47 }
 0x20c   :  { %548 = vmatmul.mubr.f32.vlgmr.msra.gmra.mrb[4].mxu1 %v1565_v42  ;;  %625 = vmatmul.mubr.f32.vlgmr.msra.gmra.mrb[8].mxu0 %v1565_v42  ;;  %v1575_v2 = vadd.f32 %v477_v50, %v466_v29  ;;  %v1112_v40 = vpack.c.bf16 %v660_v20, %v659_v30 }
 0x20d   :  { %v1573_v34 = vadd.f32 %v478_v16, %v468_v57  ;;  %1093 = vmatpush3.bf16.msra.mxu1 %v1092_v36 }
 0x20e   :  { %1095 = vmatprep.subr.bf16.mxu1 %v1094_v59 }
 0x20f   :  { %553 = vmatprep.mubr.f32.mxu1 %v1573_v34  ;;  %630 = vmatprep.mubr.f32.mxu0 %v1573_v34 }
 0x210   :  { %554 = vmatmul.mubr.f32.gmra.mrb[6].mxu1 %v1575_v2  ;;  %631 = vmatmul.mubr.f32.gmra.mrb[10].mxu0 %v1575_v2 }
 0x211   :  { %1097 = vmatpush3.bf16.msra.mxu1 %v1096_v1 }
 0x212   :  { %1099 = vmatprep.subr.bf16.mxu1 %v1098_v26 }
 0x215   :  { %1101 = vmatpush3.bf16.msra.mxu1 %v1100_v46 }
 0x216   :  { %1103 = vmatprep.subr.bf16.mxu1 %v1102_v10 }
 0x219   :  { %1105 = vmatpush3.bf16.msra.mxu1 %v1104_v17 }
 0x21a   :  { %1107 = vmatprep.subr.bf16.mxu1 %v1106_v53 }
 0x21d   :  { %1109 = vmatpush3.bf16.msra.mxu1 %v1108_v11 }
 0x21e   :  { %1111 = vmatprep.subr.bf16.mxu1 %v1110_v43 }
 0x221   :  { %1113 = vmatpush3.bf16.msra.mxu1 %v1112_v40 }
 0x222   :  { %1115 = vmatprep.subr.bf16.mxu1 %v1114_v45 }
 0x225   :  { %1117 = vmatpush3.bf16.msra.mxu1 %v1116_v63 }
 0x226   :  { %1119 = vmatprep.subr.bf16.mxu1 %v1118_v19 }
 0x229   :  { %1121 = vmatpush3.bf16.msra.mxu1 %v1120_v33 }
 0x2df   :  { %v549_v38 = vpop.f32.mrb[4].mxu1  ;;  %v626_v41 = vpop.f32.mrb[8].mxu0 }
 0x2e0   :  { %v641_v48 = vmul.f32 %v549_v38, %v1565_v42  ;;  %v551_v49 = vpop.f32.mrb[5].mxu1  ;;  %v628_v54 = vpop.f32.mrb[9].mxu0 }
 0x2e1   :  { %v642_v55 = vmul.f32 %v551_v49, %v1563_v22 }
 0x2e2   :  { %v645_v6 = vadd.f32 %v641_v48, %v549_v38 }
 0x2e3   :  { %v646_v61 = vadd.f32 %v642_v55, %v551_v49  ;;  %v555_v62 = vpop.f32.mrb[6].mxu1  ;;  %v632_v4 = vpop.f32.mrb[10].mxu0 }
 0x2e4   :  { %v643_v13 = vmul.f32 %v632_v4, %v1575_v2  ;;  %v557_v14 = vpop.f32.mrb[7].mxu1  ;;  %v634_v18 = vpop.f32.mrb[11].mxu0 }
 0x2e5   :  { %v644_v28 = vmul.f32 %v634_v18, %v1573_v34  ;;  %745 = vmatprep.mubr.f32.mxu1 %v646_v61 }
 0x2e6   :  { %746 = vmatmul.mubr.f32.vlgmr.msra.gmra.mrb[8].mxu1 %v645_v6  ;;  %v647_v36 = vadd.f32 %v643_v13, %v632_v4 }
 0x2e7   :  { %v648_v29 = vadd.f32 %v644_v28, %v634_v18 }
 0x2e9   :  { %750 = vmatprep.mubr.f32.mxu1 %v648_v29 }
 0x2ea   :  { %751 = vmatmul.mubr.f32.gmra.mrb[10].mxu1 %v647_v36 }
 0x3b9   :  { %v796_v42 = vpop.f32.mrb[8].mxu1 }
 0x3ba   :  { %v797_v50 = vpop.f32.mrb[9].mxu1 }
 0x3bb   :  { %v798_v51 = vadd.f32 %v797_v50, %v796_v42 }
 0x3bd   :  { %756 = vst [vmem:[%s1596_s5] sm:$0xff] %v798_v51  ;;  %v799_v22 = vpop.f32.mrb[10].mxu1 }
 0x3be   :  { %v800_v57 = vpop.f32.mrb[11].mxu1 }
 0x3bf   :  { %v801_v59 = vadd.f32 %v800_v57, %v799_v22 }
 0x3c1   :  { %757 = vst [vmem:[%s1596_s5 + $0x8] sm:$0xff] %v801_v59 }
 0x3c2   :  { %762 = vsyncpa [#allocation3], 1 }
 0x3c3   :  { %763 = vsyncpa [#allocation5], 1 }

</bundles_post_ra>
